<compile_context>
chip_gen: v5e
topology: v5e:2x2
jax: 0.10.0
libtpu: 0.0.40
codegen_flags: <defaults>
</compile_context>

<pallas_src>
import functools

import jax
import jax.numpy as jnp
from jax.experimental import pallas as pl
from jax.experimental.pallas import tpu as pltpu

_VMEM_LIMIT = 64 * 1024 * 1024          # raise scoped VMEM above 16/32 MiB defaults
_FUSED_BUDGET = 40 * 1024 * 1024        # double-buffered I/O + f32 temps for fused path
_TWO_PASS_BLOCK_TARGET = 4 * 1024 * 1024   # ~4 MiB f32 blocks in the fallback
_TWO_PASS_BLOCK_CAP = 6 * 1024 * 1024      # shrink threshold (ragged-dim fallback)


def _sublane_unit(dtype):
    """Minimum sublane tile: 8 (f32), 16 (bf16/f16), 32 (int8/fp8)."""
    return max(8, 32 // jnp.dtype(dtype).itemsize)


def _pick_tile(dim, unit, target):
    """Largest multiple of `unit` dividing `dim` and <= target.

    Falls back to the full dim (always a legal block size) when `dim` is not a
    multiple of `unit`, or returns `dim` itself when it already fits `target`.
    """
    if dim % unit != 0:
        return dim
    if dim <= target:
        return dim
    best = unit
    for t in range(unit, min(target, dim) + 1, unit):
        if dim % t == 0:
            best = t
    return best


def _fused_vmem_bytes(n, c_tile, hw, x_itemsize, y_itemsize):
    slab = n * c_tile * hw
    io = 2 * slab * (x_itemsize + y_itemsize)    # double-buffered input + output blocks
    tmp = 4 * slab * 4                           # f32 temporaries inside the body
    return io + tmp


def _choose_fused_c_tile(C, unit, n, hw, x_itemsize, y_itemsize, budget):
    """Channel tile for the fused path, or None if no slab fits the budget."""
    if C % unit != 0:
        return C if _fused_vmem_bytes(n, C, hw, x_itemsize, y_itemsize) <= budget else None
    cands = [t for t in range(unit, C + 1, unit) if C % t == 0]
    fits = [t for t in cands if _fused_vmem_bytes(n, t, hw, x_itemsize, y_itemsize) <= budget]
    if not fits:
        return None
    best = max(fits)
    # Prefer >=2 channel blocks so the v7x megacore can shard the (only) grid axis.
    if best == C and C >= 2 * unit:
        sub = [t for t in fits if t <= C // 2]
        if sub:
            best = max(sub)
    return best


# --------------------------------------------------------------------------
# Fused single-pass kernel: one HBM read of x, one HBM write of y.
# --------------------------------------------------------------------------
def _fused_kernel(x_ref, scale_ref, bias_ref, rm_ref, rv_ref,
                  y_ref, new_rm_ref, new_rv_ref, *, eps, momentum, n_total):
    x = x_ref[...].astype(jnp.float32)                     # (N, c_tile, HW)
    # Per-channel sum: cheap VPU adds over the leading (batch) axis, then one
    # cross-lane (XLU) reduce over the spatial axis.
    x0 = jnp.sum(x, axis=0)                                # (c_tile, HW)
    mean = jnp.sum(x0, axis=1, keepdims=True) * (1.0 / n_total)   # (c_tile, 1)
    # Centered second moment -- x is resident in VMEM, so this extra sweep adds
    # no HBM traffic and avoids E[x^2]-E[x]^2 cancellation.
    d = x - mean
    sq0 = jnp.sum(d * d, axis=0)                           # (c_tile, HW)
    var = jnp.sum(sq0, axis=1, keepdims=True) * (1.0 / n_total)   # biased
    inv_std = jax.lax.rsqrt(var + eps)
    a = scale_ref[...] * inv_std                           # fused affine coeffs
    b = bias_ref[...] - mean * a
    y_ref[...] = (x * a + b).astype(y_ref.dtype)
    unbias = n_total / (n_total - 1.0) if n_total > 1.0 else 1.0
    new_rm_ref[...] = (1.0 - momentum) * rm_ref[...] + momentum * mean
    new_rv_ref[...] = (1.0 - momentum) * rv_ref[...] + momentum * (var * unbias)


# --------------------------------------------------------------------------
# Two-pass fallback (for slabs that don't fit VMEM).
# --------------------------------------------------------------------------
def _stats_kernel(x_ref, scale_ref, bias_ref, rm_ref, rv_ref,
                  a_ref, b_ref, new_rm_ref, new_rv_ref,
                  mean_acc, m2_acc, *, eps, momentum, n_total):
    """Pass 1: per-channel mean/var over (N, H*W) + EMA + fused affine coeffs."""
    n_idx = pl.program_id(1)
    hw_idx = pl.program_id(2)
    num_hw = pl.num_programs(2)

    @pl.when(jnp.logical_and(n_idx == 0, hw_idx == 0))
    def _init():
        mean_acc[...] = jnp.zeros_like(mean_acc)
        m2_acc[...] = jnp.zeros_like(m2_acc)

    x = x_ref[...].astype(jnp.float32)                     # (c_tile, hw_tile)
    n_b = float(x.shape[1])                                # elems/channel in tile
    mu_b = jnp.sum(x, axis=1, keepdims=True) * (1.0 / n_b)
    d = x - mu_b                                           # centered in-tile
    m2_b = jnp.sum(d * d, axis=1, keepdims=True)

    # Chan/Welford combine of the running (mean, M2) with this tile's stats.
    step = (n_idx * num_hw + hw_idx).astype(jnp.float32)
    n_a = step * n_b
    n_ab = n_a + n_b
    delta = mu_b - mean_acc[...]
    mean_acc[...] = mean_acc[...] + delta * (n_b / n_ab)
    m2_acc[...] = m2_acc[...] + m2_b + (delta * delta) * (n_a * n_b / n_ab)

    @pl.when(jnp.logical_and(n_idx == pl.num_programs(1) - 1,
                             hw_idx == num_hw - 1))
    def _finalize():
        mean = mean_acc[...]
        var = m2_acc[...] * (1.0 / n_total)                # biased (unbiased=False)
        inv_std = jax.lax.rsqrt(var + eps)
        a = scale_ref[...] * inv_std
        a_ref[...] = a
        b_ref[...] = bias_ref[...] - mean * a
        unbias = n_total / (n_total - 1.0) if n_total > 1.0 else 1.0
        new_rm_ref[...] = (1.0 - momentum) * rm_ref[...] + momentum * mean
        new_rv_ref[...] = (1.0 - momentum) * rv_ref[...] + momentum * (var * unbias)


def _normalize_kernel(x_ref, a_ref, b_ref, y_ref):
    """Pass 2: y = x * a + b  (single FMA per element)."""
    x = x_ref[...].astype(jnp.float32)
    y_ref[...] = (x * a_ref[...] + b_ref[...]).astype(y_ref.dtype)


# --------------------------------------------------------------------------
# Wrapper
# --------------------------------------------------------------------------
def batchnorm2d_train(x, scale, bias, running_mean, running_var,
                      eps=1e-5, momentum=0.1, force_two_pass=False):
    """Training-mode BatchNorm2d forward.

    Args:
      x: (N, C, H, W)
      scale, bias, running_mean, running_var: (C,)
    Returns:
      y: (N, C, H, W), new_running_mean: (C,), new_running_var: (C,)
    """
    N, C, H, W = x.shape
    HW = H * W
    M = N * HW
    f32 = jnp.float32

    # Free reshape (merges contiguous trailing dims) -- no HBM transpose.
    x3 = x.reshape(N, C, HW)
    scale2 = scale.reshape(C, 1).astype(f32)
    bias2 = bias.reshape(C, 1).astype(f32)
    rm2 = running_mean.reshape(C, 1).astype(f32)
    rv2 = running_var.reshape(C, 1).astype(f32)

    unit = _sublane_unit(x.dtype)
    x_bytes = jnp.dtype(x.dtype).itemsize

    # ------------------ fused single-pass path ------------------
    fused_c_tile = None
    if not force_two_pass:
        fused_c_tile = _choose_fused_c_tile(C, unit, N, HW, x_bytes, x_bytes,
                                            _FUSED_BUDGET)
    if fused_c_tile is not None:
        c_tile = fused_c_tile
        num_c = C // c_tile
        x_spec = pl.BlockSpec((N, c_tile, HW), lambda c: (0, c, 0))
        cvec_spec = pl.BlockSpec((c_tile, 1), lambda c: (c, 0))
        cvec_shape = jax.ShapeDtypeStruct((C, 1), f32)

        y3, new_rm, new_rv = pl.pallas_call(
            functools.partial(_fused_kernel, eps=float(eps),
                              momentum=float(momentum), n_total=float(M)),
            out_shape=(jax.ShapeDtypeStruct((N, C, HW), x.dtype),
                       cvec_shape, cvec_shape),
            grid=(num_c,),
            in_specs=[x_spec, cvec_spec, cvec_spec, cvec_spec, cvec_spec],
            out_specs=(x_spec, cvec_spec, cvec_spec),
            compiler_params=pltpu.CompilerParams(
                dimension_semantics=("parallel",),
                vmem_limit_bytes=_VMEM_LIMIT),
        )(x3, scale2, bias2, rm2, rv2)
        return y3.reshape(N, C, H, W), new_rm.reshape(C), new_rv.reshape(C)

    # ------------------ two-pass fallback ------------------
    # Byte-budgeted tiles: lane tile is a multiple of 128 (or full HW when
    # ragged), channel tile a multiple of the dtype sublane unit (or full C).
    target_elems = _TWO_PASS_BLOCK_TARGET // 4
    hw_tile = _pick_tile(HW, 128, max(128, target_elems // unit))
    c_tile = _pick_tile(C, unit, max(unit, target_elems // hw_tile))
    # v7x megacore: the channel axis is the only parallel axis of the stats
    # pass, so keep >=2 channel blocks when C allows it.
    if C // c_tile <= 1 and C % unit == 0 and C >= 2 * unit:
        c_tile = _pick_tile(C, unit, C // 2)
    # Shrink oversized blocks (ragged dims may have forced a full-dim tile).
    while c_tile * hw_tile * 4 > _TWO_PASS_BLOCK_CAP:
        if hw_tile % 256 == 0:
            hw_tile //= 2
        elif c_tile % (2 * unit) == 0:
            c_tile //= 2
        else:
            break

    num_c = C // c_tile
    num_hw = HW // hw_tile
    grid = (num_c, N, num_hw)           # reduction axes (N, HW) last

    x_spec = pl.BlockSpec((None, c_tile, hw_tile), lambda c, n, m: (n, c, m))
    cvec_spec = pl.BlockSpec((c_tile, 1), lambda c, n, m: (c, 0))
    cvec_shape = jax.ShapeDtypeStruct((C, 1), f32)

    # ---- Pass 1: stats + running-stat EMA + fused affine coefficients ----
    a, b, new_rm, new_rv = pl.pallas_call(
        functools.partial(_stats_kernel, eps=float(eps),
                          momentum=float(momentum), n_total=float(M)),
        out_shape=(cvec_shape, cvec_shape, cvec_shape, cvec_shape),
        grid_spec=pltpu.PrefetchScalarGridSpec(
            num_scalar_prefetch=0,
            grid=grid,
            in_specs=[x_spec, cvec_spec, cvec_spec, cvec_spec, cvec_spec],
            out_specs=(cvec_spec, cvec_spec, cvec_spec, cvec_spec),
            scratch_shapes=[pltpu.VMEM((c_tile, 1), f32),
                            pltpu.VMEM((c_tile, 1), f32)]),
        compiler_params=pltpu.CompilerParams(
            dimension_semantics=("parallel", "arbitrary", "arbitrary"),
            vmem_limit_bytes=_VMEM_LIMIT),
    )(x3, scale2, bias2, rm2, rv2)

    # ---- Pass 2: normalize (pure elementwise, fully parallel grid) ----
    y3 = pl.pallas_call(
        _normalize_kernel,
        out_shape=jax.ShapeDtypeStruct((N, C, HW), x.dtype),
        grid_spec=pltpu.PrefetchScalarGridSpec(
            num_scalar_prefetch=0,
            grid=grid,
            in_specs=[x_spec, cvec_spec, cvec_spec],
            out_specs=x_spec),
        compiler_params=pltpu.CompilerParams(
            dimension_semantics=("parallel", "parallel", "parallel"),
            vmem_limit_bytes=_VMEM_LIMIT),
    )(x3, a, b)

    y = y3.reshape(N, C, H, W)
    return y, new_rm.reshape(C), new_rv.reshape(C)


def _reference(x, scale, bias, running_mean, running_var, eps=1e-5, momentum=0.1):
    mean = jnp.mean(x, axis=(0, 2, 3), keepdims=True)
    var = jnp.var(x, axis=(0, 2, 3), keepdims=True)  # biased
    n = x.size / x.shape[1]
    new_rm = (1 - momentum) * running_mean + momentum * mean.squeeze()
    new_rv = (1 - momentum) * running_var + momentum * var.squeeze() * (n / (n - 1))
    y = (x - mean) / jnp.sqrt(var + eps)
    y = y * scale[None, :, None, None] + bias[None, :, None, None]
    return y, new_rm, new_rv


if __name__ == "__main__":
    key = jax.random.PRNGKey(0)
    N, C, H, W = 2, 4, 16, 16

    x = jax.random.normal(key, (N, C, H, W), dtype=jnp.float32) * 2.0 + 0.5

    # Deterministic parameter init, matching the module's __init__:
    scale = jnp.ones((C,), jnp.float32)          # nn.Parameter(torch.ones(C))
    bias = jnp.zeros((C,), jnp.float32)          # nn.Parameter(torch.zeros(C))
    running_mean = jnp.zeros((C,), jnp.float32)  # buffer
    running_var = jnp.ones((C,), jnp.float32)    # buffer

    # Fused single-pass path (channel slab fits VMEM for this shape).
    y, new_rm, new_rv = batchnorm2d_train(x, scale, bias, running_mean, running_var)
    jax.block_until_ready((y, new_rm, new_rv))

    y_ref, rm_ref, rv_ref = _reference(x, scale, bias, running_mean, running_var)
    assert y.shape == (N, C, H, W) and y.dtype == x.dtype
    assert jnp.allclose(y, y_ref, atol=1e-5, rtol=1e-5)
    assert jnp.allclose(new_rm, rm_ref, atol=1e-5, rtol=1e-5)
    assert jnp.allclose(new_rv, rv_ref, atol=1e-5, rtol=1e-5)

    # Also exercise the two-pass fallback (used when the slab doesn't fit VMEM).
    N2, C2, H2, W2 = 2, 16, 32, 32
    x2 = jax.random.normal(jax.random.PRNGKey(1), (N2, C2, H2, W2), jnp.float32) * 1.5 - 0.25
    s2 = jnp.ones((C2,), jnp.float32)
    b2 = jnp.zeros((C2,), jnp.float32)
    rm0 = jnp.zeros((C2,), jnp.float32)
    rv0 = jnp.ones((C2,), jnp.float32)
    y2, nrm2, nrv2 = batchnorm2d_train(x2, s2, b2, rm0, rv0, force_two_pass=True)
    jax.block_until_ready((y2, nrm2, nrv2))
    y2r, rm2r, rv2r = _reference(x2, s2, b2, rm0, rv0)
    assert jnp.allclose(y2, y2r, atol=1e-4, rtol=1e-4)
    assert jnp.allclose(nrm2, rm2r, atol=1e-5, rtol=1e-5)
    assert jnp.allclose(nrv2, rv2r, atol=1e-4, rtol=1e-4)

    # TODO(synk): eval-mode forward (running-stat normalization) and the custom
    # backward() of the module are not implemented; only the training-mode
    # forward + running-stat EMA.
    print("KERNEL_OK")
</pallas_src>

<mosaic_0001>
module attributes {stable_mosaic.version = 11 : i64} {
  func.func @_fused_kernel(%arg0: i32, %arg1: memref<2x4x256xf32, #tpu.memory_space<vmem>>, %arg2: memref<4x1xf32, #tpu.memory_space<vmem>>, %arg3: memref<4x1xf32, #tpu.memory_space<vmem>>, %arg4: memref<4x1xf32, #tpu.memory_space<vmem>>, %arg5: memref<4x1xf32, #tpu.memory_space<vmem>>, %arg6: memref<2x4x256xf32, #tpu.memory_space<vmem>>, %arg7: memref<4x1xf32, #tpu.memory_space<vmem>>, %arg8: memref<4x1xf32, #tpu.memory_space<vmem>>) attributes {dimension_semantics = [#tpu.dimension_semantics<parallel>], iteration_bounds = array<i64: 1>, scalar_prefetch = 0 : i64, scratch_operands = 0 : i64, tpu.core_type = #tpu.core_type<tc>, window_params = [{transform_indices = @transform_0, window_bounds = array<i64: 2, 4, 256>}, {transform_indices = @transform_1, window_bounds = array<i64: 4, 1>}, {transform_indices = @transform_2, window_bounds = array<i64: 4, 1>}, {transform_indices = @transform_3, window_bounds = array<i64: 4, 1>}, {transform_indices = @transform_4, window_bounds = array<i64: 4, 1>}, {transform_indices = @transform_5, window_bounds = array<i64: 2, 4, 256>}, {transform_indices = @transform_6, window_bounds = array<i64: 4, 1>}, {transform_indices = @transform_7, window_bounds = array<i64: 4, 1>}]} {
    %c0 = arith.constant 0 : index
    %c0_0 = arith.constant 0 : index
    %c0_1 = arith.constant 0 : index
    %0 = vector.load %arg1[%c0, %c0_0, %c0_1] : memref<2x4x256xf32, #tpu.memory_space<vmem>>, vector<2x4x256xf32>
    %cst = arith.constant dense<0.000000e+00> : vector<4x256xf32>
    %1 = vector.multi_reduction <add>, %0, %cst [0] : vector<2x4x256xf32> to vector<4x256xf32>
    %cst_2 = arith.constant dense<0.000000e+00> : vector<4xf32>
    %2 = vector.multi_reduction <add>, %1, %cst_2 [1] : vector<4x256xf32> to vector<4xf32>
    %3 = vector.shape_cast %2 : vector<4xf32> to vector<4x1xf32>
    %cst_3 = arith.constant 0.001953125 : f32
    %4 = vector.broadcast %cst_3 : f32 to vector<4x1xf32>
    %5 = arith.mulf %3, %4 : vector<4x1xf32>
    %6 = vector.shape_cast %5 : vector<4x1xf32> to vector<1x4x1xf32>
    %7 = vector.broadcast %6 : vector<1x4x1xf32> to vector<2x4x256xf32>
    %8 = arith.subf %0, %7 : vector<2x4x256xf32>
    %9 = arith.mulf %8, %8 : vector<2x4x256xf32>
    %cst_4 = arith.constant dense<0.000000e+00> : vector<4x256xf32>
    %10 = vector.multi_reduction <add>, %9, %cst_4 [0] : vector<2x4x256xf32> to vector<4x256xf32>
    %cst_5 = arith.constant dense<0.000000e+00> : vector<4xf32>
    %11 = vector.multi_reduction <add>, %10, %cst_5 [1] : vector<4x256xf32> to vector<4xf32>
    %12 = vector.shape_cast %11 : vector<4xf32> to vector<4x1xf32>
    %cst_6 = arith.constant 0.001953125 : f32
    %13 = vector.broadcast %cst_6 : f32 to vector<4x1xf32>
    %14 = arith.mulf %12, %13 : vector<4x1xf32>
    %cst_7 = arith.constant 9.99999974E-6 : f32
    %15 = vector.broadcast %cst_7 : f32 to vector<4x1xf32>
    %16 = arith.addf %14, %15 : vector<4x1xf32>
    %17 = math.rsqrt %16 : vector<4x1xf32>
    %c0_8 = arith.constant 0 : index
    %c0_9 = arith.constant 0 : index
    %18 = vector.load %arg2[%c0_8, %c0_9] : memref<4x1xf32, #tpu.memory_space<vmem>>, vector<4x1xf32>
    %19 = arith.mulf %18, %17 : vector<4x1xf32>
    %c0_10 = arith.constant 0 : index
    %c0_11 = arith.constant 0 : index
    %20 = vector.load %arg3[%c0_10, %c0_11] : memref<4x1xf32, #tpu.memory_space<vmem>>, vector<4x1xf32>
    %21 = arith.mulf %5, %19 : vector<4x1xf32>
    %22 = arith.subf %20, %21 : vector<4x1xf32>
    %23 = vector.shape_cast %19 : vector<4x1xf32> to vector<1x4x1xf32>
    %24 = vector.broadcast %23 : vector<1x4x1xf32> to vector<2x4x256xf32>
    %25 = arith.mulf %0, %24 : vector<2x4x256xf32>
    %26 = vector.shape_cast %22 : vector<4x1xf32> to vector<1x4x1xf32>
    %27 = vector.broadcast %26 : vector<1x4x1xf32> to vector<2x4x256xf32>
    %28 = arith.addf %25, %27 : vector<2x4x256xf32>
    %c0_12 = arith.constant 0 : index
    %c0_13 = arith.constant 0 : index
    %c0_14 = arith.constant 0 : index
    %29 = vector.load %arg6[%c0_12, %c0_13, %c0_14] : memref<2x4x256xf32, #tpu.memory_space<vmem>>, vector<2x4x256xf32>
    tpu.vector_store %arg6[%c0_12, %c0_13, %c0_14], %28 {strides = array<i32>} : memref<2x4x256xf32, #tpu.memory_space<vmem>>, vector<2x4x256xf32>,
    %c0_15 = arith.constant 0 : index
    %c0_16 = arith.constant 0 : index
    %30 = vector.load %arg4[%c0_15, %c0_16] : memref<4x1xf32, #tpu.memory_space<vmem>>, vector<4x1xf32>
    %cst_17 = arith.constant 0.899999976 : f32
    %31 = vector.broadcast %cst_17 : f32 to vector<4x1xf32>
    %32 = arith.mulf %31, %30 : vector<4x1xf32>
    %cst_18 = arith.constant 1.000000e-01 : f32
    %33 = vector.broadcast %cst_18 : f32 to vector<4x1xf32>
    %34 = arith.mulf %33, %5 : vector<4x1xf32>
    %35 = arith.addf %32, %34 : vector<4x1xf32>
    %c0_19 = arith.constant 0 : index
    %c0_20 = arith.constant 0 : index
    %36 = vector.load %arg7[%c0_19, %c0_20] : memref<4x1xf32, #tpu.memory_space<vmem>>, vector<4x1xf32>
    tpu.vector_store %arg7[%c0_19, %c0_20], %35 {strides = array<i32>} : memref<4x1xf32, #tpu.memory_space<vmem>>, vector<4x1xf32>,
    %c0_21 = arith.constant 0 : index
    %c0_22 = arith.constant 0 : index
    %37 = vector.load %arg5[%c0_21, %c0_22] : memref<4x1xf32, #tpu.memory_space<vmem>>, vector<4x1xf32>
    %cst_23 = arith.constant 0.899999976 : f32
    %38 = vector.broadcast %cst_23 : f32 to vector<4x1xf32>
    %39 = arith.mulf %38, %37 : vector<4x1xf32>
    %cst_24 = arith.constant 1.00195694 : f32
    %40 = vector.broadcast %cst_24 : f32 to vector<4x1xf32>
    %41 = arith.mulf %14, %40 : vector<4x1xf32>
    %cst_25 = arith.constant 1.000000e-01 : f32
    %42 = vector.broadcast %cst_25 : f32 to vector<4x1xf32>
    %43 = arith.mulf %42, %41 : vector<4x1xf32>
    %44 = arith.addf %39, %43 : vector<4x1xf32>
    %c0_26 = arith.constant 0 : index
    %c0_27 = arith.constant 0 : index
    %45 = vector.load %arg8[%c0_26, %c0_27] : memref<4x1xf32, #tpu.memory_space<vmem>>, vector<4x1xf32>
    tpu.vector_store %arg8[%c0_26, %c0_27], %44 {strides = array<i32>} : memref<4x1xf32, #tpu.memory_space<vmem>>, vector<4x1xf32>,
    return
  }
  func.func @transform_0(%arg0: i32) -> (i32, i32, i32) {
    %c0_i32 = arith.constant 0 : i32
    %c0_i32_0 = arith.constant 0 : i32
    %c0_i32_1 = arith.constant 0 : i32
    return %c0_i32, %arg0, %c0_i32_0 : i32, i32, i32
  }
  func.func @transform_1(%arg0: i32) -> (i32, i32) {
    %c0_i32 = arith.constant 0 : i32
    %c0_i32_0 = arith.constant 0 : i32
    return %arg0, %c0_i32 : i32, i32
  }
  func.func @transform_2(%arg0: i32) -> (i32, i32) {
    %c0_i32 = arith.constant 0 : i32
    %c0_i32_0 = arith.constant 0 : i32
    return %arg0, %c0_i32 : i32, i32
  }
  func.func @transform_3(%arg0: i32) -> (i32, i32) {
    %c0_i32 = arith.constant 0 : i32
    %c0_i32_0 = arith.constant 0 : i32
    return %arg0, %c0_i32 : i32, i32
  }
  func.func @transform_4(%arg0: i32) -> (i32, i32) {
    %c0_i32 = arith.constant 0 : i32
    %c0_i32_0 = arith.constant 0 : i32
    return %arg0, %c0_i32 : i32, i32
  }
  func.func @transform_5(%arg0: i32) -> (i32, i32, i32) {
    %c0_i32 = arith.constant 0 : i32
    %c0_i32_0 = arith.constant 0 : i32
    %c0_i32_1 = arith.constant 0 : i32
    return %c0_i32, %arg0, %c0_i32_0 : i32, i32, i32
  }
  func.func @transform_6(%arg0: i32) -> (i32, i32) {
    %c0_i32 = arith.constant 0 : i32
    %c0_i32_0 = arith.constant 0 : i32
    return %arg0, %c0_i32 : i32, i32
  }
  func.func @transform_7(%arg0: i32) -> (i32, i32) {
    %c0_i32 = arith.constant 0 : i32
    %c0_i32_0 = arith.constant 0 : i32
    return %arg0, %c0_i32 : i32, i32
  }
}

</mosaic_0001>

<bundles_post_ra>
// kernel: tpu_custom_call.1
= control target key start
LH: loop header
LB: loop body
LE: loop exit
PB: predicated region body
PF: predicated region fallthrough
CT: control target
= control target key end

     0   :  { %13 = vsyncpa [#allocation3], 0  ;;  %s349_s0 = inlined_call_operand.hbm [shape: f32[2,4,256], index: 0, kind: input, shape index: {}]   ;;  %s350_s1 = inlined_call_operand.vmem [shape: f32[4,1], index: 1, kind: input, shape index: {}]   ;;  %s351_s2 = inlined_call_operand.vmem [shape: f32[4,1], index: 2, kind: input, shape index: {}]   ;;  %s352_s3 = inlined_call_operand.vmem [shape: f32[4,1], index: 3, kind: input, shape index: {}]   ;;  %s353_s4 = inlined_call_operand.vmem [shape: f32[4,1], index: 4, kind: input, shape index: {}]   ;;  %s354_s5 = inlined_call_operand.hbm [shape: f32[2,4,256], index: 5, kind: output, shape index: {0}]   ;;  %s355_s6 = inlined_call_operand.vmem [shape: f32[4,1], index: 6, kind: output, shape index: {1}]   ;;  %s356_s7 = inlined_call_operand.vmem [shape: f32[4,1], index: 7, kind: output, shape index: {2}]  }
   0x1   :  { %14 = vsyncpa [#allocation4], 0  ;;  %s19_s26 = sshll.u32 %s349_s0, 4  ;;  %s244_s27 = smov [#allocation2]   ;;  %s20_s26 = int_to_ptr.hbm [resolvable:$true] %s19_s26 }
   0x2   :  { %s21_s28 = sshll.u32 %s244_s27, 4  ;;  %s245_s29 = smov 128   ;;  %s22_s28 = int_to_ptr.vmem [resolvable:$true] %s21_s28 }
   0x3   :  { %s246_s30 = smov 8  }
   0x4   :  { %27 = dma.hbm_to_vmem [thread:$0]  %s20_s26, 256, %s22_s28, [#allocation3], %s245_s29, %s245_s29, %s246_s30  }
   0x5   :  { %240 = dma.done.wait [#allocation3], 256  }
   0x6   :  { %241 = vsyncadd [#allocation3], 4294967040  ;;  %v296_v0 = vld [vmem:[#allocation2] sm:$0xff]  ;;  %v298_v1 = vld [vmem:[#allocation2 + $0x8] sm:$0xff]  ;;  %vm55_vm0 = vcmask 1043456   ;;  %vm147_vm1 = vcmask 3072  }
   0x7   :  { %44 = vst [vmem:[#allocation1] ss:$2 sm:$0xff] %v296_v0  ;;  %v247_v15 = vmov 839922192   ;;  %v143_v17 = vld [vmem:[%s352_s3] sm:$0xf] }
   0x8   :  { %48 = vst [vmem:[#allocation1 + $0x10] ss:$2 sm:$0xff] %v298_v1  ;;  %v70_v16 = vunpack.c.l.s4 %v247_v15  ;;  %v144_v20 = vmul.f32 0.9, %v143_v17  ;;  %v248_v42 = vmov 0   ;;  %s161_s18 = sshll.u32 %s354_s5, 4  ;;  %s162_s18 = int_to_ptr.hbm [resolvable:$true] %s161_s18 }
   0x9   :  { %188 = vset.pattern.permute.xlu1 %v248_v42  ;;  %189 = vset.pattern.permute.xlu0 %v248_v42  ;;  %v149_v43 = vld [vmem:[%s353_s4] sm:$0xf] }
   0xa   :  { %v311_v18 = vunpack.c.0.s8 %v70_v16  ;;  %v150_v46 = vmul.f32 0.9, %v149_v43  ;;  %v114_v57 = vld [vmem:[%s350_s1] sm:$0xf]  ;;  %s249_s1 = smov [#allocation5]  }
   0xb   :  { %v116_v61 = vld [vmem:[%s351_s2] sm:$0xf] }
   0xe   :  { %v45_v2 = vld.sshfl [vmem:[#allocation1] sm:$0xff pattern:$0x75316420]  ;;  %v46_v3 = vld.sshfl [vmem:[#allocation1 + $0x8] sm:$0xff pattern:$0x75316420] }
   0xf   :  { %v49_v4 = vld.sshfl [vmem:[#allocation1 + $0x10] sm:$0xff pattern:$0x75316420]  ;;  %v50_v5 = vld.sshfl [vmem:[#allocation1 + $0x18] sm:$0xff pattern:$0x75316420] }
  0x10   :  { %v56_v6 = vsel %vm55_vm0, %v45_v2, 0.0  ;;  %v57_v7 = vsel %vm55_vm0, %v49_v4, 0.0  ;;  %v59_v8 = vsel %vm55_vm0, %v46_v3, 0.0  ;;  %v60_v9 = vsel %vm55_vm0, %v50_v5, 0.0 }
  0x11   :  { %v58_v10 = vadd.f32 %v57_v7, %v56_v6  ;;  %v61_v11 = vadd.f32 %v60_v9, %v59_v8 }
  0x13   :  { %v62_v12 = vsel %vm55_vm0, %v58_v10, 0.0  ;;  %v63_v13 = vsel %vm55_vm0, %v61_v11, 0.0 }
  0x14   :  { %v64_v14 = vadd.f32 %v63_v13, %v62_v12 }
  0x16   :  { %65 = vadd.xlane.f32.xlu0 %v64_v14 }
  0x89   :  { %v66_v19 = vpop.xlane.xlu0 %65 }
  0x8a   :  { %v67_v21 = vmul.f32 0.001953125, %v66_v19 }
  0x8c   :  { %v72_v22 = vperm.slane %v67_v21, %v311_v18  ;;  %v145_v23 = vmul.f32 0.1, %v67_v21 }
  0x8e   :  { %v74_v24 = vsub.f32 %v296_v0, %v72_v22  ;;  %v75_v25 = vsub.f32 %v298_v1, %v72_v22  ;;  %v146_v26 = vadd.f32 %v145_v23, %v144_v20 }
  0x90   :  { %v76_v27 = vmul.f32 %v74_v24, %v74_v24  ;;  %v77_v28 = vmul.f32 %v75_v25, %v75_v25  ;;  %148 = vst.msk [vmem:[%s355_s6] sm:$0xf] %vm147_vm1, %v146_v26 }
  0x92   :  { %80 = vst [vmem:[#allocation1] ss:$2 sm:$0xff] %v76_v27 }
  0x93   :  { %84 = vst [vmem:[#allocation1 + $0x10] ss:$2 sm:$0xff] %v77_v28 }
  0x99   :  { %v81_v29 = vld.sshfl [vmem:[#allocation1] sm:$0xff pattern:$0x75316420]  ;;  %v82_v30 = vld.sshfl [vmem:[#allocation1 + $0x8] sm:$0xff pattern:$0x75316420] }
  0x9a   :  { %v85_v31 = vld.sshfl [vmem:[#allocation1 + $0x10] sm:$0xff pattern:$0x75316420]  ;;  %v86_v32 = vld.sshfl [vmem:[#allocation1 + $0x18] sm:$0xff pattern:$0x75316420] }
  0x9b   :  { %v91_v33 = vsel %vm55_vm0, %v81_v29, 0.0  ;;  %v92_v34 = vsel %vm55_vm0, %v85_v31, 0.0  ;;  %v94_v35 = vsel %vm55_vm0, %v82_v30, 0.0  ;;  %v95_v36 = vsel %vm55_vm0, %v86_v32, 0.0 }
  0x9c   :  { %v93_v37 = vadd.f32 %v92_v34, %v91_v33  ;;  %v96_v38 = vadd.f32 %v95_v36, %v94_v35 }
  0x9e   :  { %v97_v39 = vsel %vm55_vm0, %v93_v37, 0.0  ;;  %v98_v40 = vsel %vm55_vm0, %v96_v38, 0.0 }
  0x9f   :  { %v99_v41 = vadd.f32 %v98_v40, %v97_v39 }
  0xa1   :  { %100 = vadd.xlane.f32.xlu0 %v99_v41 }
 0x114   :  { %v101_v44 = vpop.xlane.xlu0 %100 }
 0x115   :  { %v102_v45 = vmul.f32 0.001953125, %v101_v44 }
 0x117   :  { %v103_v47 = vadd.f32 1e-05, %v102_v45  ;;  %v151_v48 = vmul.f32 1.0019569, %v102_v45 }
 0x119   :  { %190 = vrsqrt.f32 %v103_v47  ;;  %v152_v49 = vmul.f32 0.1, %v151_v48  ;;  %vm110_vm3 = vweird.f32 %v103_v47 }
 0x11b   :  { %v153_v50 = vadd.f32 %v152_v49, %v150_v46 }
 0x11d   :  { %154 = vst.msk [vmem:[%s356_s7] sm:$0xf] %vm147_vm1, %v153_v50  ;;  %s159_s7 = sshll.u32 %s249_s1, 4  ;;  %s160_s7 = int_to_ptr.vmem [resolvable:$true] %s159_s7 }
 0x11f   :  { %v191_v51 = vpop.eup %190 }
 0x120   :  { %v105_v52 = vmul.f32 %v191_v51, %v103_v47  ;;  %vm111_vm2 = vweird.f32 %v191_v51 }
 0x121   :  { %vm112_vm4 = vmor %vm110_vm3, %vm111_vm2 }
 0x122   :  { %v106_v53 = vmul.f32 %v191_v51, %v105_v52 }
 0x124   :  { %v107_v54 = vmul.f32 0.5, %v106_v53 }
 0x126   :  { %v108_v55 = vsub.f32 1.5, %v107_v54 }
 0x128   :  { %v109_v56 = vmul.f32 %v191_v51, %v108_v55 }
 0x12a   :  { %v113_v58 = vsel %vm112_vm4, %v191_v51, %v109_v56 }
 0x12b   :  { %v115_v59 = vmul.f32 %v114_v57, %v113_v58 }
 0x12d   :  { %121 = vperm.xlu1 %188, %v115_v59   ;;  %v117_v60 = vmul.f32 %v115_v59, %v67_v21 }
 0x12f   :  { %v118_v62 = vsub.f32 %v116_v61, %v117_v60 }
 0x135   :  { %132 = vperm.xlu1 %188, %v118_v62  }
 0x19f   :  { %v122_v63 = vpop.permute.xlu1 %121 }
 0x1a0   :  { %v126_v2 = vperm.slane %v122_v63, %v311_v18 }
 0x1a2   :  { %v128_v4 = vmul.f32 %v126_v2, %v296_v0  ;;  %v129_v5 = vmul.f32 %v126_v2, %v298_v1 }
 0x1a7   :  { %v133_v3 = vpop.permute.xlu1 %132 }
 0x1a8   :  { %v137_v6 = vperm.slane %v133_v3, %v311_v18 }
 0x1aa   :  { %v139_v7 = vadd.f32 %v137_v6, %v128_v4  ;;  %v140_v8 = vadd.f32 %v137_v6, %v129_v5 }
 0x1ac   :  { %141 = vst [vmem:[#allocation5] sm:$0xff] %v139_v7 }
 0x1ad   :  { %142 = vst [vmem:[#allocation5 + $0x8] sm:$0xff] %v140_v8 }
 0x1ae   :  { %167 = dma.vmem_to_hbm [thread:$0]  %s160_s7, 256, %s162_s18, [#allocation4], %s245_s29, %s245_s29, %s246_s30  }
 0x1af   :  { %242 = dma.done.wait [#allocation4], 256  }
 0x1b0   :  { %243 = vsyncadd [#allocation4], 4294967040 }
 0x1b1   :  { %180 = vsyncpa [#allocation3], 1 }
 0x1b2   :  { %181 = vsyncpa [#allocation4], 1 }

</bundles_post_ra>
